<compile_context>
chip_gen: v6e
topology: v6e:2x2x1
jax: 0.10.0
libtpu: 0.0.40
codegen_flags: <defaults>
</compile_context>

<pallas_src>
import math
from functools import partial

import jax
import jax.numpy as jnp
from jax.experimental import pallas as pl
from jax.experimental.pallas import tpu as pltpu

MAX_ATTENTION_HEAD = 8
ATTN_EMB_SIZE = [256, 512, 1024, 2048]


def is_pow_2(x: int) -> bool:
    return x > 0 and x & (x - 1) == 0


def round_emb(emb_size, arr):
    for candidate in arr:
        if candidate >= emb_size:
            return candidate
    return arr[-1]


def round_attn_emb(emb_size):
    return round_emb(emb_size, ATTN_EMB_SIZE)


# ------------------------------ rotary helpers -------------------------------

def _rope_tables(seq_len, dim, theta=10000.0):
    """cos/sin tables matching rotary_embedding_torch (pairwise-repeated freqs)."""
    inv_freq = 1.0 / (theta ** (jnp.arange(0, dim, 2, dtype=jnp.float32) / dim))
    pos = jnp.arange(seq_len, dtype=jnp.float32)
    freqs = pos[:, None] * inv_freq[None, :]          # (S, D/2)
    freqs = jnp.repeat(freqs, 2, axis=-1)             # (S, D): [f0,f0,f1,f1,...]
    return jnp.cos(freqs), jnp.sin(freqs)


def _rotate_half_matrix(dim):
    """(D, D) signed permutation M with (x @ M)[2i] = -x[2i+1], (x @ M)[2i+1] = x[2i]."""
    e = jnp.arange(dim)[:, None]
    d = jnp.arange(dim)[None, :]
    plus = ((d == e + 1) & (e % 2 == 0)).astype(jnp.float32)
    minus = ((d == e - 1) & (e % 2 == 1)).astype(jnp.float32)
    return plus - minus


# --------------------------------- kernels ------------------------------------

def _qkv_proj_kernel(emb_ref, wq_ref, wk_ref, wv_ref, q_ref, k_ref, v_ref):
    x = emb_ref[0]                                   # (S, E)
    q_ref[0] = jnp.dot(x, wq_ref[...], preferred_element_type=jnp.float32).astype(q_ref.dtype)
    k_ref[0] = jnp.dot(x, wk_ref[...], preferred_element_type=jnp.float32).astype(k_ref.dtype)
    v_ref[0] = jnp.dot(x, wv_ref[...], preferred_element_type=jnp.float32).astype(v_ref.dtype)


def _rope_attn_kernel(q_ref, k_ref, v_ref, cos_ref, sin_ref, rot_ref, o_ref, *, scale):
    q = q_ref[0, 0]                                  # (S, D)
    k = k_ref[0, 0]
    v = v_ref[0, 0]
    cos = cos_ref[...]
    sin = sin_ref[...]
    rot = rot_ref[...]

    # Interleaved rotary: x*cos + rotate_half(x)*sin; rotate_half via a signed
    # permutation matmul (rides the MXU, no cross-lane shuffles needed).
    q = q * cos + jnp.dot(q, rot, preferred_element_type=jnp.float32) * sin
    k = k * cos + jnp.dot(k, rot, preferred_element_type=jnp.float32) * sin

    # scores = q @ k^T * (1 / sqrt(n_head))
    s = jax.lax.dot_general(
        q, k, dimension_numbers=(((1,), (1,)), ((), ())),
        preferred_element_type=jnp.float32) * scale                      # (S, S)
    m = jnp.max(s, axis=-1, keepdims=True)
    e = jnp.exp(s - m)
    p = e / jnp.sum(e, axis=-1, keepdims=True)
    o_ref[0, 0] = jnp.dot(p, v, preferred_element_type=jnp.float32).astype(o_ref.dtype)


def _out_proj_kernel(x_ref, w_ref, o_ref):
    o_ref[0] = jnp.dot(x_ref[0], w_ref[...],
                       preferred_element_type=jnp.float32).astype(o_ref.dtype)


# -------------------------------- wrappers -------------------------------------

def _qkv_proj(emb, wq, wk, wv):
    B, S, E = emb.shape
    P = wq.shape[1]
    out_sds = jax.ShapeDtypeStruct((B, S, P), jnp.float32)
    w_spec = pl.BlockSpec((E, P), lambda b: (0, 0))
    return pl.pallas_call(
        _qkv_proj_kernel,
        out_shape=(out_sds, out_sds, out_sds),
        grid=(B,),
        in_specs=[pl.BlockSpec((1, S, E), lambda b: (b, 0, 0)), w_spec, w_spec, w_spec],
        out_specs=(pl.BlockSpec((1, S, P), lambda b: (b, 0, 0)),) * 3,
        compiler_params=pltpu.CompilerParams(dimension_semantics=("parallel",)),
    )(emb, wq, wk, wv)


def _rope_attention(q, k, v, cos, sin, rot, n_head):
    B, H, S, D = q.shape
    scale = 1.0 / math.sqrt(n_head)
    qkv_spec = pl.BlockSpec((1, 1, S, D), lambda b, h: (b, h, 0, 0))
    tbl_spec = pl.BlockSpec((S, D), lambda b, h: (0, 0))
    rot_spec = pl.BlockSpec((D, D), lambda b, h: (0, 0))
    cost = pl.CostEstimate(
        flops=B * H * (4 * S * D * D + 4 * S * S * D),
        transcendentals=B * H * S * S,
        bytes_accessed=4 * (4 * B * H * S * D + 2 * S * D + D * D),
    )
    return pl.pallas_call(
        partial(_rope_attn_kernel, scale=scale),
        out_shape=jax.ShapeDtypeStruct((B, H, S, D), jnp.float32),
        grid=(B, H),
        in_specs=[qkv_spec, qkv_spec, qkv_spec, tbl_spec, tbl_spec, rot_spec],
        out_specs=pl.BlockSpec((1, 1, S, D), lambda b, h: (b, h, 0, 0)),
        compiler_params=pltpu.CompilerParams(
            dimension_semantics=("parallel", "parallel")),
        cost_estimate=cost,
    )(q, k, v, cos, sin, rot)


def _out_proj(x, wo):
    B, S, P = x.shape
    E = wo.shape[1]
    return pl.pallas_call(
        _out_proj_kernel,
        out_shape=jax.ShapeDtypeStruct((B, S, E), jnp.float32),
        grid=(B,),
        in_specs=[pl.BlockSpec((1, S, P), lambda b: (b, 0, 0)),
                  pl.BlockSpec((P, E), lambda b: (0, 0))],
        out_specs=pl.BlockSpec((1, S, E), lambda b: (b, 0, 0)),
        compiler_params=pltpu.CompilerParams(dimension_semantics=("parallel",)),
    )(x, wo)


def attention_forward(emb, wq, wk, wv, wo, n_head):
    """Pallas forward pass matching Attention.forward.

    Weights are stored as (in, out) effective matrices, i.e. y = x @ w.
    """
    B, S, E = emb.shape
    P = wq.shape[1]
    D = P // n_head

    q, k, v = _qkv_proj(emb, wq, wk, wv)                      # (B, S, P) each

    # torch: .contiguous().view(B, n_head, S, -1)  (row-major reinterpretation)
    q = q.reshape(B, n_head, S, D)
    k = k.reshape(B, n_head, S, D)
    v = v.reshape(B, n_head, S, D)

    cos, sin = _rope_tables(S, D)
    rot = _rotate_half_matrix(D)
    attn = _rope_attention(q, k, v, cos, sin, rot, n_head)    # (B, H, S, D)

    # torch: out.transpose(1, 2).contiguous().view(B, S, -1)
    out = jnp.swapaxes(attn, 1, 2).reshape(B, S, P)

    # RowLinear: transpose(1,2) -> view(B,S,P) -> Linear(P,E) -> view(B,E,S) -> transpose(1,2)
    xr = jnp.swapaxes(out, 1, 2).reshape(B, S, P)
    y = _out_proj(xr, wo)                                      # (B, S, E)
    return jnp.swapaxes(y.reshape(B, E, S), 1, 2)


# ------------------------------ pure-JAX reference -----------------------------

def _reference(emb, wq, wk, wv, wo, n_head):
    hi = jax.lax.Precision.HIGHEST
    B, S, E = emb.shape
    P = wq.shape[1]
    D = P // n_head
    q = jnp.einsum("bse,ep->bsp", emb, wq, precision=hi).reshape(B, n_head, S, D)
    k = jnp.einsum("bse,ep->bsp", emb, wk, precision=hi).reshape(B, n_head, S, D)
    v = jnp.einsum("bse,ep->bsp", emb, wv, precision=hi).reshape(B, n_head, S, D)
    cos, sin = _rope_tables(S, D)

    def rope(t):
        t2 = t.reshape(B, n_head, S, D // 2, 2)
        rh = jnp.stack([-t2[..., 1], t2[..., 0]], axis=-1).reshape(B, n_head, S, D)
        return t * cos + rh * sin

    q, k = rope(q), rope(k)
    logits = jnp.einsum("bhsd,bhtd->bhst", q, k, precision=hi) / math.sqrt(n_head)
    p = jax.nn.softmax(logits, axis=-1)
    o = jnp.einsum("bhst,bhtd->bhsd", p, v, precision=hi)
    o = jnp.swapaxes(o, 1, 2).reshape(B, S, P)
    xr = jnp.swapaxes(o, 1, 2).reshape(B, S, P)
    y = jnp.einsum("bsp,pe->bse", xr, wo, precision=hi)
    return jnp.swapaxes(y.reshape(B, E, S), 1, 2)


if __name__ == "__main__":
    B, S = 2, 16
    emb_size, scale_ratio, head_count = 128, 2, 2
    assert head_count <= MAX_ATTENTION_HEAD and is_pow_2(head_count)
    proj_embed = round_attn_emb(emb_size * scale_ratio)        # 256
    assert proj_embed % head_count == 0

    key = jax.random.PRNGKey(0)
    k0, k1, k2, k3, k4 = jax.random.split(key, 5)
    emb = jax.random.normal(k0, (B, S, emb_size), dtype=jnp.float32)
    wq = jax.random.normal(k1, (emb_size, proj_embed), dtype=jnp.float32) / math.sqrt(emb_size)
    wk = jax.random.normal(k2, (emb_size, proj_embed), dtype=jnp.float32) / math.sqrt(emb_size)
    wv = jax.random.normal(k3, (emb_size, proj_embed), dtype=jnp.float32) / math.sqrt(emb_size)
    wo = jax.random.normal(k4, (proj_embed, emb_size), dtype=jnp.float32) / math.sqrt(proj_embed)

    out = attention_forward(emb, wq, wk, wv, wo, head_count)
    out = jax.block_until_ready(out)
    assert out.shape == (B, S, emb_size)

    ref = _reference(emb, wq, wk, wv, wo, head_count)
    max_err = float(jnp.max(jnp.abs(out - ref)))
    assert max_err < 5e-2, f"Pallas output mismatch vs reference (max abs err = {max_err})"

    print("KERNEL_OK")
</pallas_src>

<mosaic_0001>
module attributes {stable_mosaic.version = 11 : i64} {
  func.func @_qkv_proj_kernel(%arg0: i32, %arg1: memref<1x16x128xf32, #tpu.memory_space<vmem>>, %arg2: memref<128x256xf32, #tpu.memory_space<vmem>>, %arg3: memref<128x256xf32, #tpu.memory_space<vmem>>, %arg4: memref<128x256xf32, #tpu.memory_space<vmem>>, %arg5: memref<1x16x256xf32, #tpu.memory_space<vmem>>, %arg6: memref<1x16x256xf32, #tpu.memory_space<vmem>>, %arg7: memref<1x16x256xf32, #tpu.memory_space<vmem>>) attributes {dimension_semantics = [#tpu.dimension_semantics<parallel>], iteration_bounds = array<i64: 2>, scalar_prefetch = 0 : i64, scratch_operands = 0 : i64, tpu.core_type = #tpu.core_type<tc>, window_params = [{transform_indices = @transform_0, window_bounds = array<i64: 1, 16, 128>}, {pipeline_mode = #tpu.pipeline_mode<synchronous>, transform_indices = @transform_1, window_bounds = array<i64: 128, 256>}, {pipeline_mode = #tpu.pipeline_mode<synchronous>, transform_indices = @transform_2, window_bounds = array<i64: 128, 256>}, {pipeline_mode = #tpu.pipeline_mode<synchronous>, transform_indices = @transform_3, window_bounds = array<i64: 128, 256>}, {transform_indices = @transform_4, window_bounds = array<i64: 1, 16, 256>}, {transform_indices = @transform_5, window_bounds = array<i64: 1, 16, 256>}, {transform_indices = @transform_6, window_bounds = array<i64: 1, 16, 256>}]} {
    %c0 = arith.constant 0 : index
    %c0_0 = arith.constant 0 : index
    %c0_1 = arith.constant 0 : index
    %0 = vector.load %arg1[%c0, %c0_0, %c0_1] : memref<1x16x128xf32, #tpu.memory_space<vmem>>, vector<1x16x128xf32>
    %1 = vector.shape_cast %0 : vector<1x16x128xf32> to vector<16x128xf32>
    %c0_2 = arith.constant 0 : index
    %c0_3 = arith.constant 0 : index
    %2 = vector.load %arg2[%c0_2, %c0_3] : memref<128x256xf32, #tpu.memory_space<vmem>>, vector<128x256xf32>
    %cst = arith.constant dense<0.000000e+00> : vector<16x256xf32>
    %3 = tpu.matmul %1, %2, %cst {dimension_numbers = #tpu.dot_dimension_numbers<[1], [0], [0], [1], [0, 0, 1, 1], [], []>} : vector<16x128xf32>, vector<128x256xf32>, vector<16x256xf32> -> vector<16x256xf32>
    %c0_4 = arith.constant 0 : index
    %c0_5 = arith.constant 0 : index
    %c0_6 = arith.constant 0 : index
    %4 = vector.load %arg5[%c0_4, %c0_5, %c0_6] : memref<1x16x256xf32, #tpu.memory_space<vmem>>, vector<1x16x256xf32>
    %5 = vector.shape_cast %4 : vector<1x16x256xf32> to vector<16x256xf32>
    %6 = vector.shape_cast %3 : vector<16x256xf32> to vector<1x16x256xf32>
    tpu.vector_store %arg5[%c0_4, %c0_5, %c0_6], %6 {strides = array<i32>} : memref<1x16x256xf32, #tpu.memory_space<vmem>>, vector<1x16x256xf32>,
    %c0_7 = arith.constant 0 : index
    %c0_8 = arith.constant 0 : index
    %7 = vector.load %arg3[%c0_7, %c0_8] : memref<128x256xf32, #tpu.memory_space<vmem>>, vector<128x256xf32>
    %cst_9 = arith.constant dense<0.000000e+00> : vector<16x256xf32>
    %8 = tpu.matmul %1, %7, %cst_9 {dimension_numbers = #tpu.dot_dimension_numbers<[1], [0], [0], [1], [0, 0, 1, 1], [], []>} : vector<16x128xf32>, vector<128x256xf32>, vector<16x256xf32> -> vector<16x256xf32>
    %c0_10 = arith.constant 0 : index
    %c0_11 = arith.constant 0 : index
    %c0_12 = arith.constant 0 : index
    %9 = vector.load %arg6[%c0_10, %c0_11, %c0_12] : memref<1x16x256xf32, #tpu.memory_space<vmem>>, vector<1x16x256xf32>
    %10 = vector.shape_cast %9 : vector<1x16x256xf32> to vector<16x256xf32>
    %11 = vector.shape_cast %8 : vector<16x256xf32> to vector<1x16x256xf32>
    tpu.vector_store %arg6[%c0_10, %c0_11, %c0_12], %11 {strides = array<i32>} : memref<1x16x256xf32, #tpu.memory_space<vmem>>, vector<1x16x256xf32>,
    %c0_13 = arith.constant 0 : index
    %c0_14 = arith.constant 0 : index
    %12 = vector.load %arg4[%c0_13, %c0_14] : memref<128x256xf32, #tpu.memory_space<vmem>>, vector<128x256xf32>
    %cst_15 = arith.constant dense<0.000000e+00> : vector<16x256xf32>
    %13 = tpu.matmul %1, %12, %cst_15 {dimension_numbers = #tpu.dot_dimension_numbers<[1], [0], [0], [1], [0, 0, 1, 1], [], []>} : vector<16x128xf32>, vector<128x256xf32>, vector<16x256xf32> -> vector<16x256xf32>
    %c0_16 = arith.constant 0 : index
    %c0_17 = arith.constant 0 : index
    %c0_18 = arith.constant 0 : index
    %14 = vector.load %arg7[%c0_16, %c0_17, %c0_18] : memref<1x16x256xf32, #tpu.memory_space<vmem>>, vector<1x16x256xf32>
    %15 = vector.shape_cast %14 : vector<1x16x256xf32> to vector<16x256xf32>
    %16 = vector.shape_cast %13 : vector<16x256xf32> to vector<1x16x256xf32>
    tpu.vector_store %arg7[%c0_16, %c0_17, %c0_18], %16 {strides = array<i32>} : memref<1x16x256xf32, #tpu.memory_space<vmem>>, vector<1x16x256xf32>,
    return
  }
  func.func @transform_0(%arg0: i32) -> (i32, i32, i32) {
    %c0_i32 = arith.constant 0 : i32
    %c0_i32_0 = arith.constant 0 : i32
    %c0_i32_1 = arith.constant 0 : i32
    return %arg0, %c0_i32, %c0_i32_0 : i32, i32, i32
  }
  func.func @transform_1(%arg0: i32) -> (i32, i32) {
    %c0_i32 = arith.constant 0 : i32
    %c0_i32_0 = arith.constant 0 : i32
    %c0_i32_1 = arith.constant 0 : i32
    return %c0_i32, %c0_i32_0 : i32, i32
  }
  func.func @transform_2(%arg0: i32) -> (i32, i32) {
    %c0_i32 = arith.constant 0 : i32
    %c0_i32_0 = arith.constant 0 : i32
    %c0_i32_1 = arith.constant 0 : i32
    return %c0_i32, %c0_i32_0 : i32, i32
  }
  func.func @transform_3(%arg0: i32) -> (i32, i32) {
    %c0_i32 = arith.constant 0 : i32
    %c0_i32_0 = arith.constant 0 : i32
    %c0_i32_1 = arith.constant 0 : i32
    return %c0_i32, %c0_i32_0 : i32, i32
  }
  func.func @transform_4(%arg0: i32) -> (i32, i32, i32) {
    %c0_i32 = arith.constant 0 : i32
    %c0_i32_0 = arith.constant 0 : i32
    %c0_i32_1 = arith.constant 0 : i32
    return %arg0, %c0_i32, %c0_i32_0 : i32, i32, i32
  }
  func.func @transform_5(%arg0: i32) -> (i32, i32, i32) {
    %c0_i32 = arith.constant 0 : i32
    %c0_i32_0 = arith.constant 0 : i32
    %c0_i32_1 = arith.constant 0 : i32
    return %arg0, %c0_i32, %c0_i32_0 : i32, i32, i32
  }
  func.func @transform_6(%arg0: i32) -> (i32, i32, i32) {
    %c0_i32 = arith.constant 0 : i32
    %c0_i32_0 = arith.constant 0 : i32
    %c0_i32_1 = arith.constant 0 : i32
    return %arg0, %c0_i32, %c0_i32_0 : i32, i32, i32
  }
}

</mosaic_0001>

<bundles_post_ra>
// kernel: tpu_custom_call.1
= control target key start
LH: loop header
LB: loop body
LE: loop exit
PB: predicated region body
PF: predicated region fallthrough
CT: control target
= control target key end

     0   :  { %s1631_s0 = inlined_call_operand.hbm [shape: f32[2,16,128], index: 0, kind: input, shape index: {}]   ;;  %s1632_s1 = inlined_call_operand.hbm [shape: f32[128,256], index: 1, kind: input, shape index: {}]   ;;  %s1633_s2 = inlined_call_operand.hbm [shape: f32[128,256], index: 2, kind: input, shape index: {}]   ;;  %s1634_s3 = inlined_call_operand.hbm [shape: f32[128,256], index: 3, kind: input, shape index: {}]   ;;  %s1635_s4 = inlined_call_operand.hbm [shape: f32[2,16,256], index: 4, kind: output, shape index: {0}]   ;;  %s1636_s5 = inlined_call_operand.hbm [shape: f32[2,16,256], index: 5, kind: output, shape index: {1}]   ;;  %s1637_s6 = inlined_call_operand.hbm [shape: f32[2,16,256], index: 6, kind: output, shape index: {2}]  }
   0x1   :  { %1643 = sst [smem:[#allocation19_spill]] %s1631_s0 }
   0x2   :  { %12 = vsyncpa [#allocation3], 0 }
   0x3   :  { %14 = vsyncpa [#allocation3 + $0x1], 0 }
   0x4   :  { %15 = vsyncpa [#allocation6], 0 }
   0x5   :  { %16 = vsyncpa [#allocation9], 0 }
   0x6   :  { %17 = vsyncpa [#allocation4], 0 }
   0x7   :  { %19 = vsyncpa [#allocation4 + $0x1], 0 }
   0x8   :  { %20 = vsyncpa [#allocation12], 0 }
   0x9   :  { %22 = vsyncpa [#allocation12 + $0x1], 0  ;;  %s1335_s21 = smov 0   ;;  %s1337_s22 = smov 0  }
   0xa   :  { %s1339_s23 = smov 0   ;;  %s1341_s24 = smov 0  }
   0xb LB: > { %s1356_s25 = sadd.s32 4294967295, %s1284_s24   ;;  %s1640_s26 = sadd.s32 4294967294, %s1284_s24   ;;  %s1284_s24 = sphi %s1341_s24, %s1665_s24   ;;  %s1280_s23 = sphi %s1339_s23, %s1664_s23   ;;  %s1276_s22 = sphi %s1337_s22, %s1663_s22   ;;  %s1272_s21 = sphi %s1335_s21, %s1662_s21  }
   0xc   : > { %p48_p0 = scmp.ne.s32.totalorder %s1276_s22, %s1272_s21  ;;  %p1638_p1 = scmp.eq.s32.totalorder %s1356_s25, 0 }
   0xd   : > { %p141_p3 = scmp.eq.s32.totalorder %s1640_s26, 1  ;;  %p893_p5 = scmp.ge.s32.totalorder %s1284_s24, 1 }
   0xe   : > { %p1367_p4 = por %p1638_p1, %p48_p0  ;;  %p200_p7 = scmp.lt.s32.totalorder %s1284_s24, 3 }
   0xf   : > { %p1372_p6 = por %p141_p3, %p48_p0  ;;  %s1286_s30 = smov [#allocation5]  }
  0x10   : > { %s1644_s27 = scalar_select %p1367_p4, 1, 0 }
  0x11   : > { %s1645_s28 = scalar_select %p1372_p6, 1, 0 }
  0x12   : > { %p1377_p8 = pnand %p893_p5, %p200_p7  ;;  %s212_s7 = sshll.u32 %s1286_s30, 4  ;;  %s213_s7 = int_to_ptr.vmem [resolvable:$true] %s212_s7 }
  0x13   : > { %s1287_s9 = smov [#allocation7]   ;;  %s1288_s11 = smov [#allocation8]  }
  0x14   : > { %s1646_s29 = scalar_select %p1377_p8, 1, 0 }
  0x15   : > { %p976_p9 = pneg %p1377_p8  ;;  %s225_s10 = sshll.u32 %s1287_s9, 4  ;;  %s226_s10 = int_to_ptr.vmem [resolvable:$true] %s225_s10 }
  0x16   : > { %s238_s12 = sshll.u32 %s1288_s11, 4  ;;  %s1061_s13 = scalar_lea.vmem %s213_s7, 4096  ;;  %s239_s12 = int_to_ptr.vmem [resolvable:$true] %s238_s12 }
  0x17   : > { %p1386_p11 = pnand %p976_p9, %p1638_p1  ;;  %p1062_p13 = scmp.ne.s32.totalorder %s213_s7, %s1061_s13 }
  0x18   : > { %p1069_p5 = scmp.lt.s32.totalorder %s213_s7, %s213_s7  ;;  %p1070_p7 = scmp.lt.s32.totalorder %s1061_s13, %s1061_s13 }
  0x19   : > { %p1052_p12 = pneg %p1386_p11 }
  0x1a   : > { %p1071_p9 = por %p1070_p7, %p1069_p5 }
  0x1b   : > { %p1064_p0 = pnand %p1062_p13, %p1052_p12 }
  0x1d   : > { %p1065_p3 = pneg %p1064_p0 }
  0x1f   : > { %p1072_p10 = pnand %p1071_p9, %p1065_p3 }
  0x21   : > { %1075 = shalt.err (!%p1072_p10)
}
  0x22   : > { %s1289_s14 = smov 256   ;;  %s1290_s15 = smov 16  }
  0x23   : > { %979 = dma.hbm_to_vmem [thread:$0]  (!%p1386_p11), %s1632_s1, 4096, %s213_s7, [#allocation6], %s1289_s14, %s1289_s14, %s1290_s15  }
  0x24   : > { %s1087_s18 = scalar_lea.vmem %s226_s10, 4096  ;;  %p1095_p2 = scmp.lt.s32.totalorder %s226_s10, %s226_s10 }
  0x25   : > { %p1088_p1 = scmp.ne.s32.totalorder %s226_s10, %s1087_s18  ;;  %p1096_p6 = scmp.lt.s32.totalorder %s1087_s18, %s1087_s18 }
  0x27   : > { %p1090_p13 = pnand %p1088_p1, %p1052_p12  ;;  %p1097_p5 = por %p1096_p6, %p1095_p2 }
  0x29   : > { %p1091_p0 = pneg %p1090_p13 }
  0x2b   : > { %p1098_p3 = pnand %p1097_p5, %p1091_p0 }
  0x2d   : > { %1101 = shalt.err (!%p1098_p3)
}
  0x2e   : > { %982 = dma.hbm_to_vmem [thread:$0]  (!%p1386_p11), %s1633_s2, 4096, %s226_s10, [#allocation6], %s1289_s14, %s1289_s14, %s1290_s15  }
  0x2f   : > { %s1113_s30 = scalar_lea.vmem %s239_s12, 4096  ;;  %p1121_p9 = scmp.lt.s32.totalorder %s239_s12, %s239_s12 }
  0x30   : > { %p1114_p10 = scmp.ne.s32.totalorder %s239_s12, %s1113_s30  ;;  %p1122_p13 = scmp.lt.s32.totalorder %s1113_s30, %s1113_s30 }
  0x32   : > { %p1116_p7 = pnand %p1114_p10, %p1052_p12  ;;  %p1123_p4 = por %p1122_p13, %p1121_p9 }
  0x34   : > { %p1117_p1 = pneg %p1116_p7 }
  0x36   : > { %p1124_p2 = pnand %p1123_p4, %p1117_p1 }
  0x38   : > { %1127 = shalt.err (!%p1124_p2)
}
  0x39   : > { %985 = dma.hbm_to_vmem [thread:$0]  (!%p1386_p11), %s1634_s3, 4096, %s239_s12, [#allocation9], %s1289_s14, %s1289_s14, %s1290_s15  }
  0x3a   : > { %s1417_s10 = sadd.s32 1, %s1284_s24   ;;  %s35_s8 = sadd.s32 1, %s1280_s23 }
  0x3b   : > { %s32_s11 = ssub.s32 %s1284_s24, %s1417_s10  ;;  %p42_p6 = scmp.ne.s32.totalorder %s1280_s23, %s1276_s22 }
  0x3c   : > { %p33_p4 = scmp.eq.s32.totalorder %s32_s11, 0  ;;  %p43_p12 = scmp.eq.s32.totalorder %s1284_s24, 0 }
  0x3d   : > { %p1003_p0 = scmp.lt.s32.totalorder %s1284_s24, 2  ;;  %p1648_p3 = scmp.eq.s32.totalorder %s1356_s25, 1 }
  0x3e   : > { %s1427_s13 = scalar_select %p33_p4, %s1280_s23, %s35_s8  }
  0x3f   : > { %p44_p5 = por %p43_p12, %p42_p6  ;;  %p1431_p10 = por %p1648_p3, %p42_p6 }
  0x40   : > { %s252_s17 = sand.u32 1, %s1280_s23   ;;  %s920_s18 = sshll.u32 %s1284_s24, 8 }
  0x41   : > { %s1649_s16 = scalar_select %p1431_p10, 1, 0 }
  0x42   : > { %s898_s12 = sshll.u32 %s252_s17, 4  ;;  %s1650_s0 = sld [smem:[#allocation19_spill]] }
  0x43   : > { %s256_s20 = scalar_lea.vmem [#allocation2], %s898_s12  ;;  %p1442_p11 = pnand %p1003_p0, %p44_p5 }
  0x44   : > { %s263_s30 = sshll.u32 %s256_s20, 4  ;;  %s1448_s9 = scalar_lea.sflag [#allocation3], %s252_s17  ;;  %s1446_s30 = int_to_ptr.vmem [resolvable:$true] %s263_s30 }
  0x45   : > { %p1130_p1 = pneg %p1442_p11 }
  0x48   : > { %s1440_s19 = scalar_lea.hbm %s1650_s0, %s920_s18  ;;  %s1133_s12 = scalar_lea.hbm %s1650_s0, 512 }
  0x49   : > { %s1128_s11 = scalar_lea.hbm %s1440_s19, 256  ;;  %p1134_p2 = scmp.lt.s32.totalorder %s1440_s19, %s1650_s0 }
  0x4a   : > { %p1129_p7 = scmp.ne.s32.totalorder %s1440_s19, %s1128_s11  ;;  %p1135_p4 = scmp.lt.s32.totalorder %s1133_s12, %s1128_s11 }
  0x4c   : > { %p1131_p9 = pnand %p1130_p1, %p1129_p7  ;;  %p1136_p6 = por %p1135_p4, %p1134_p2 }
  0x4e   : > { %p1132_p13 = pneg %p1131_p9 }
  0x50   : > { %p1137_p12 = pnand %p1136_p6, %p1132_p13 }
  0x52   : > { %1140 = shalt.err (!%p1137_p12)
}
  0x53   : > { %s1141_s17 = scalar_lea.vmem %s1446_s30, 256  ;;  %s1291_s20 = smov [#allocation2]  }
  0x54   : > { %p1142_p0 = scmp.ne.s32.totalorder %s1446_s30, %s1141_s17  ;;  %s1146_s26 = sshll.u32 %s1291_s20, 4  ;;  %s1147_s26 = int_to_ptr.vmem [resolvable:$false] %s1146_s26 }
  0x55   : > { %s1148_s8 = scalar_lea.vmem %s1147_s26, 512  ;;  %p1149_p7 = scmp.lt.s32.totalorder %s1446_s30, %s1147_s26 }
  0x56   : > { %p1144_p5 = pnand %p1142_p0, %p1130_p1  ;;  %p1150_p9 = scmp.lt.s32.totalorder %s1148_s8, %s1141_s17 }
  0x58   : > { %p1145_p3 = pneg %p1144_p5  ;;  %p1151_p10 = por %p1150_p9, %p1149_p7 }
  0x5a   : > { %p1152_p8 = pnand %p1151_p10, %p1145_p3 }
  0x5c   : > { %1155 = shalt.err (!%p1152_p8)
}
  0x5d   : > { %s1292_s11 = smov 128   ;;  %s1293_s18 = smov 8  }
  0x5e   : > { %989 = dma.hbm_to_vmem [thread:$0]  (!%p1442_p11), %s1440_s19, 256, %s1446_s30, %s1448_s9, %s1292_s11, %s1292_s11, %s1293_s18  }
  0x5f   : > { %p1652_p1 = scmp.ne.s32.totalorder %s1646_s29, 0 }
  0x60   : > { %s1472_s12 = sand.u32 (!%p1652_p1), 1, %s1276_s22   ;;  %p1653_p8 = scmp.ne.s32.totalorder (!%p1652_p1), %s1644_s27, 0 }
  0x61   : > { %275 = sbr.rel (%p1652_p1) target bundleno = 425 (0x1a9), region = 36  ;;  %s902_s26 = sshll.u32 (!%p1652_p1), %s1472_s12, 4 }
  0x62   : > { %s278_s14 = scalar_lea.sflag (!%p1652_p1), [#allocation3], %s1472_s12  ;;  %s1476_s15 = scalar_lea.vmem (!%p1652_p1), [#allocation2], %s902_s26 }
  0x66   : > { %1251 = dma.done.wait (%p1653_p8), %s278_s14, 256  }
  0x67   : > { %1253 = vsyncadd (%p1653_p8), %s278_s14, 4294967040  ;;  %p1654_p10 = scmp.eq.s32.totalorder %s1356_s25, 0 }
  0x69   : > { %1255 = dma.done.wait (%p1654_p10), [#allocation6], 8192   ;;  %p1655_p11 = pmov %p1654_p10 }
  0x6a   : > { %p1656_p13 = pmov %p1654_p10 }
  0x6b   : > { %1257 = vsyncadd (%p1655_p11), [#allocation6], 4294959104 }
  0x6c   : > { %1259 = dma.done.wait (%p1656_p13), [#allocation9], 4096   ;;  %p1657_p2 = pmov %p1654_p10 }
  0x6d   : > { %v1294_v0 = vmov 0.0   ;;  %v365_v1 = vld [vmem:[#allocation5 + $0xf8] sm:$0xff]  ;;  %v364_v3 = vld [vmem:[#allocation5 + $0xf0] sm:$0xff]  ;;  %v363_v5 = vld [vmem:[#allocation5 + $0xe8] sm:$0xff]  ;;  %s1504_s27 = sshll.u32 %s1472_s12, 5  ;;  %s678_s9 = sand.u32 1, %s1356_s25  }
  0x6e   : > { %1261 = vsyncadd (%p1657_p2), [#allocation9], 4294963200  ;;  %430 = vmatprep.mubr.f32.mxu0 %v1294_v0  ;;  %543 = vmatprep.mubr.f32.mxu1 %v1294_v0  ;;  %v478_v2 = vld [vmem:[#allocation7 + $0xf8] sm:$0xff]  ;;  %v477_v4 = vld [vmem:[#allocation7 + $0xf0] sm:$0xff]  ;;  %s317_s29 = scalar_lea.vmem [#allocation10], %s1504_s27  ;;  %s324_s19 = scalar_lea.vmem [#allocation11], %s1504_s27 }
  0x6f   : > { %366 = vmatprep.subr.mxu0 %v365_v1  ;;  %479 = vmatprep.subr.mxu1 %v478_v2  ;;  %v476_v6 = vld [vmem:[#allocation7 + $0xe8] sm:$0xff]  ;;  %v362_v7 = vld [vmem:[#allocation5 + $0xe0] sm:$0xff]  ;;  %v361_v9 = vld [vmem:[#allocation5 + $0xd8] sm:$0xff]  ;;  %s697_s30 = sshll.u32 %s317_s29, 4  ;;  %s713_s7 = sshll.u32 %s324_s19, 4  ;;  %s1512_s30 = int_to_ptr.vmem [resolvable:$true] %s697_s30  ;;  %s1514_s7 = int_to_ptr.vmem [resolvable:$true] %s713_s7 }
  0x70   : > { %367 = vmatpush1.msra.mxu0 %v364_v3  ;;  %480 = vmatpush1.msra.mxu1 %v477_v4  ;;  %v475_v8 = vld [vmem:[#allocation7 + $0xe0] sm:$0xff]  ;;  %v474_v10 = vld [vmem:[#allocation7 + $0xd8] sm:$0xff]  ;;  %v360_v11 = vld [vmem:[#allocation5 + $0xd0] sm:$0xff]  ;;  %s1510_s17 = sshll.u32 %s1356_s25, 9  ;;  %s1528_s14 = scalar_lea.sflag [#allocation12], %s678_s9 }
  0x71   : > { %368 = vmatprep.subr.mxu0 %v363_v5  ;;  %481 = vmatprep.subr.mxu1 %v476_v6  ;;  %v473_v12 = vld [vmem:[#allocation7 + $0xd0] sm:$0xff]  ;;  %v359_v13 = vld [vmem:[#allocation5 + $0xc8] sm:$0xff]  ;;  %v358_v15 = vld [vmem:[#allocation5 + $0xc0] sm:$0xff]  ;;  %s1520_s11 = scalar_lea.hbm %s1636_s5, %s1510_s17  ;;  %s1526_s26 = scalar_lea.hbm %s1635_s4, %s1510_s17 }
  0x72   : > { %369 = vmatpush1.msra.mxu0 %v362_v7  ;;  %482 = vmatpush1.msra.mxu1 %v475_v8  ;;  %v472_v14 = vld [vmem:[#allocation7 + $0xc8] sm:$0xff]  ;;  %v471_v16 = vld [vmem:[#allocation7 + $0xc0] sm:$0xff]  ;;  %v357_v17 = vld [vmem:[#allocation5 + $0xb8] sm:$0xff]  ;;  %p1658_p6 = scmp.ne.s32.totalorder %s1649_s16, 0  ;;  %s1295_s20 = smov [#allocation11]  }
  0x73   : > { %370 = vmatprep.subr.mxu0 %v361_v9  ;;  %483 = vmatprep.subr.mxu1 %v474_v10  ;;  %v470_v18 = vld [vmem:[#allocation7 + $0xb8] sm:$0xff]  ;;  %v356_v19 = vld [vmem:[#allocation5 + $0xb0] sm:$0xff]  ;;  %v355_v21 = vld [vmem:[#allocation5 + $0xa8] sm:$0xff]  ;;  %s1160_s8 = sshll.u32 %s1295_s20, 4  ;;  %s1161_s8 = int_to_ptr.vmem [resolvable:$false] %s1160_s8 }
  0x74   : > { %371 = vmatpush1.msra.mxu0 %v360_v11  ;;  %484 = vmatpush1.msra.mxu1 %v473_v12  ;;  %v469_v20 = vld [vmem:[#allocation7 + $0xb0] sm:$0xff]  ;;  %v468_v22 = vld [vmem:[#allocation7 + $0xa8] sm:$0xff]  ;;  %v354_v23 = vld [vmem:[#allocation5 + $0xa0] sm:$0xff]  ;;  %s1162_s0 = scalar_lea.vmem %s1161_s8, 1024  ;;  %p1163_p5 = scmp.lt.s32.totalorder %s1514_s7, %s1161_s8 }
  0x75   : > { %372 = vmatprep.subr.mxu0 %v359_v13  ;;  %485 = vmatprep.subr.mxu1 %v472_v14  ;;  %v467_v24 = vld [vmem:[#allocation7 + $0xa0] sm:$0xff]  ;;  %v353_v25 = vld [vmem:[#allocation5 + $0x98] sm:$0xff]  ;;  %v352_v27 = vld [vmem:[#allocation5 + $0x90] sm:$0xff] }
  0x76   : > { %373 = vmatpush1.msra.mxu0 %v358_v15  ;;  %486 = vmatpush1.msra.mxu1 %v471_v16  ;;  %v466_v26 = vld [vmem:[#allocation7 + $0x98] sm:$0xff]  ;;  %v465_v28 = vld [vmem:[#allocation7 + $0x90] sm:$0xff]  ;;  %v351_v29 = vld [vmem:[#allocation5 + $0x88] sm:$0xff] }
  0x77   : > { %374 = vmatprep.subr.mxu0 %v357_v17  ;;  %487 = vmatprep.subr.mxu1 %v470_v18  ;;  %v464_v30 = vld [vmem:[#allocation7 + $0x88] sm:$0xff]  ;;  %v350_v31 = vld [vmem:[#allocation5 + $0x80] sm:$0xff]  ;;  %v349_v33 = vld [vmem:[#allocation5 + $0x78] sm:$0xff] }
  0x78   : > { %375 = vmatpush1.msra.mxu0 %v356_v19  ;;  %488 = vmatpush1.msra.mxu1 %v469_v20  ;;  %v463_v32 = vld [vmem:[#allocation7 + $0x80] sm:$0xff]  ;;  %v462_v34 = vld [vmem:[#allocation7 + $0x78] sm:$0xff]  ;;  %v348_v35 = vld [vmem:[#allocation5 + $0x70] sm:$0xff] }
  0x79   : > { %376 = vmatprep.subr.mxu0 %v355_v21  ;;  %489 = vmatprep.subr.mxu1 %v468_v22  ;;  %v461_v36 = vld [vmem:[#allocation7 + $0x70] sm:$0xff]  ;;  %v347_v37 = vld [vmem:[#allocation5 + $0x68] sm:$0xff]  ;;  %v346_v39 = vld [vmem:[#allocation5 + $0x60] sm:$0xff] }
  0x7a   : > { %377 = vmatpush1.msra.mxu0 %v354_v23  ;;  %490 = vmatpush1.msra.mxu1 %v467_v24  ;;  %v460_v38 = vld [vmem:[#allocation7 + $0x68] sm:$0xff]  ;;  %v459_v40 = vld [vmem:[#allocation7 + $0x60] sm:$0xff]  ;;  %v345_v41 = vld [vmem:[#allocation5 + $0x58] sm:$0xff] }
  0x7b   : > { %378 = vmatprep.subr.mxu0 %v353_v25  ;;  %491 = vmatprep.subr.mxu1 %v466_v26  ;;  %v458_v42 = vld [vmem:[#allocation7 + $0x58] sm:$0xff]  ;;  %v344_v43 = vld [vmem:[#allocation5 + $0x50] sm:$0xff]  ;;  %v343_v45 = vld [vmem:[#allocation5 + $0x48] sm:$0xff] }
  0x7c   : > { %379 = vmatpush1.msra.mxu0 %v352_v27  ;;  %492 = vmatpush1.msra.mxu1 %v465_v28  ;;  %v457_v44 = vld [vmem:[#allocation7 + $0x50] sm:$0xff]  ;;  %v456_v46 = vld [vmem:[#allocation7 + $0x48] sm:$0xff]  ;;  %v342_v47 = vld [vmem:[#allocation5 + $0x40] sm:$0xff] }
  0x7d   : > { %380 = vmatprep.subr.mxu0 %v351_v29  ;;  %493 = vmatprep.subr.mxu1 %v464_v30  ;;  %v455_v48 = vld [vmem:[#allocation7 + $0x40] sm:$0xff]  ;;  %v341_v49 = vld [vmem:[#allocation5 + $0x38] sm:$0xff]  ;;  %v340_v51 = vld [vmem:[#allocation5 + $0x30] sm:$0xff] }
  0x7e   : > { %381 = vmatpush1.msra.mxu0 %v350_v31  ;;  %494 = vmatpush1.msra.mxu1 %v463_v32  ;;  %v454_v50 = vld [vmem:[#allocation7 + $0x38] sm:$0xff]  ;;  %v453_v52 = vld [vmem:[#allocation7 + $0x30] sm:$0xff]  ;;  %v339_v53 = vld [vmem:[#allocation5 + $0x28] sm:$0xff] }
  0x7f   : > { %382 = vmatprep.subr.mxu0 %v349_v33  ;;  %495 = vmatprep.subr.mxu1 %v462_v34  ;;  %v452_v54 = vld [vmem:[#allocation7 + $0x28] sm:$0xff]  ;;  %v338_v55 = vld [vmem:[#allocation5 + $0x20] sm:$0xff]  ;;  %v337_v57 = vld [vmem:[#allocation5 + $0x18] sm:$0xff] }
  0x80   : > { %383 = vmatpush1.msra.mxu0 %v348_v35  ;;  %496 = vmatpush1.msra.mxu1 %v461_v36  ;;  %v451_v56 = vld [vmem:[#allocation7 + $0x20] sm:$0xff]  ;;  %v450_v58 = vld [vmem:[#allocation7 + $0x18] sm:$0xff]  ;;  %v336_v59 = vld [vmem:[#allocation5 + $0x10] sm:$0xff] }
  0x81   : > { %384 = vmatprep.subr.mxu0 %v347_v37  ;;  %497 = vmatprep.subr.mxu1 %v460_v38  ;;  %v449_v60 = vld [vmem:[#allocation7 + $0x10] sm:$0xff]  ;;  %v335_v61 = vld [vmem:[#allocation5 + $0x8] sm:$0xff]  ;;  %v334_v63 = vld [vmem:[#allocation5] sm:$0xff] }
  0x82   : > { %385 = vmatpush1.msra.mxu0 %v346_v39  ;;  %498 = vmatpush1.msra.mxu1 %v459_v40  ;;  %v448_v62 = vld [vmem:[#allocation7 + $0x8] sm:$0xff]  ;;  %v447_v1 = vld [vmem:[#allocation7] sm:$0xff]  ;;  %v591_v3 = vld [vmem:[#allocation8 + $0xf8] sm:$0xff] }
  0x83   : > { %386 = vmatprep.subr.mxu0 %v345_v41  ;;  %499 = vmatprep.subr.mxu1 %v458_v42  ;;  %v1493_v2 = vld [vmem:[%s1476_s15] sm:$0xff]  ;;  %v589_v5 = vld [vmem:[#allocation8 + $0xe8] sm:$0xff]  ;;  %v587_v7 = vld [vmem:[#allocation8 + $0xd8] sm:$0xff] }
  0x84   : > { %387 = vmatpush1.msra.mxu0 %v344_v43  ;;  %500 = vmatpush1.msra.mxu1 %v457_v44  ;;  %v590_v4 = vld [vmem:[#allocation8 + $0xf0] sm:$0xff]  ;;  %v588_v6 = vld [vmem:[#allocation8 + $0xe0] sm:$0xff]  ;;  %v585_v9 = vld [vmem:[#allocation8 + $0xc8] sm:$0xff] }
  0x85   : > { %388 = vmatprep.subr.mxu0 %v343_v45  ;;  %501 = vmatprep.subr.mxu1 %v456_v46  ;;  %v586_v8 = vld [vmem:[#allocation8 + $0xd0] sm:$0xff]  ;;  %v584_v10 = vld [vmem:[#allocation8 + $0xc0] sm:$0xff]  ;;  %v583_v11 = vld [vmem:[#allocation8 + $0xb8] sm:$0xff] }
  0x86   : > { %389 = vmatpush1.msra.mxu0 %v342_v47  ;;  %502 = vmatpush1.msra.mxu1 %v455_v48  ;;  %v582_v12 = vld [vmem:[#allocation8 + $0xb0] sm:$0xff]  ;;  %v581_v13 = vld [vmem:[#allocation8 + $0xa8] sm:$0xff]  ;;  %v580_v14 = vld [vmem:[#allocation8 + $0xa0] sm:$0xff] }
  0x87   : > { %390 = vmatprep.subr.mxu0 %v341_v49  ;;  %503 = vmatprep.subr.mxu1 %v454_v50  ;;  %v579_v15 = vld [vmem:[#allocation8 + $0x98] sm:$0xff]  ;;  %v578_v16 = vld [vmem:[#allocation8 + $0x90] sm:$0xff]  ;;  %v577_v17 = vld [vmem:[#allocation8 + $0x88] sm:$0xff] }
  0x88   : > { %391 = vmatpush1.msra.mxu0 %v340_v51  ;;  %504 = vmatpush1.msra.mxu1 %v453_v52  ;;  %v576_v18 = vld [vmem:[#allocation8 + $0x80] sm:$0xff]  ;;  %v575_v19 = vld [vmem:[#allocation8 + $0x78] sm:$0xff]  ;;  %v574_v20 = vld [vmem:[#allocation8 + $0x70] sm:$0xff] }
  0x89   : > { %392 = vmatprep.subr.mxu0 %v339_v53  ;;  %505 = vmatprep.subr.mxu1 %v452_v54  ;;  %v573_v21 = vld [vmem:[#allocation8 + $0x68] sm:$0xff]  ;;  %v572_v22 = vld [vmem:[#allocation8 + $0x60] sm:$0xff]  ;;  %v571_v23 = vld [vmem:[#allocation8 + $0x58] sm:$0xff] }
  0x8a   : > { %393 = vmatpush1.msra.mxu0 %v338_v55  ;;  %506 = vmatpush1.msra.mxu1 %v451_v56  ;;  %v570_v24 = vld [vmem:[#allocation8 + $0x50] sm:$0xff]  ;;  %v569_v25 = vld [vmem:[#allocation8 + $0x48] sm:$0xff]  ;;  %v568_v26 = vld [vmem:[#allocation8 + $0x40] sm:$0xff] }
  0x8b   : > { %394 = vmatprep.subr.mxu0 %v337_v57  ;;  %507 = vmatprep.subr.mxu1 %v450_v58  ;;  %v567_v27 = vld [vmem:[#allocation8 + $0x38] sm:$0xff]  ;;  %v566_v28 = vld [vmem:[#allocation8 + $0x30] sm:$0xff]  ;;  %v565_v30 = vld [vmem:[#allocation8 + $0x28] sm:$0xff] }
  0x8c   : > { %395 = vmatpush1.msra.mxu0 %v336_v59  ;;  %508 = vmatpush1.msra.mxu1 %v449_v60  ;;  %v333_v29 = vld [vmem:[%s1476_s15 + $0x8] sm:$0xff]  ;;  %v564_v31 = vld [vmem:[#allocation8 + $0x20] sm:$0xff]  ;;  %v562_v33 = vld [vmem:[#allocation8 + $0x10] sm:$0xff]  ;;  %s1156_s15 = scalar_lea.vmem %s1514_s7, 512 }
  0x8d   : > { %396 = vmatprep.subr.mxu0 %v335_v61  ;;  %509 = vmatprep.subr.mxu1 %v448_v62  ;;  %v563_v32 = vld [vmem:[#allocation8 + $0x18] sm:$0xff]  ;;  %v561_v34 = vld [vmem:[#allocation8 + $0x8] sm:$0xff]  ;;  %v560_v35 = vld [vmem:[#allocation8] sm:$0xff]  ;;  %p1157_p4 = scmp.ne.s32.totalorder %s1514_s7, %s1156_s15  ;;  %p1164_p3 = scmp.lt.s32.totalorder %s1162_s0, %s1156_s15 }
  0x8e   : > { %397 = vmatpush1.msra.mxu0 %v334_v63  ;;  %510 = vmatpush1.msra.mxu1 %v447_v1 }
  0x8f   : > { %431 = vmatmul.mubr.f32.vlgmr.msra.gmra.mxu0 %v1493_v2  ;;  %544 = vmatmul.mubr.f32.vlgmr.msra.gmra.mxu1 %v1493_v2  ;;  %p1158_p12 = pnand %p1157_p4, %p1658_p6  ;;  %p1165_p7 = por %p1164_p3, %p1163_p5 }
  0x90   : > { %592 = vmatprep.subr.mxu0 %v591_v3  ;;  %924 = vmatprep.subr.mxu1 %v591_v3 }
  0x91   : > { %593 = vmatpush1.msra.mxu0 %v590_v4  ;;  %940 = vmatpush1.msra.mxu1 %v590_v4  ;;  %p1159_p0 = pneg %p1158_p12 }
  0x92   : > { %594 = vmatprep.subr.mxu0 %v589_v5  ;;  %925 = vmatprep.subr.mxu1 %v589_v5 }
  0x93   : > { %595 = vmatpush1.msra.mxu0 %v588_v6  ;;  %941 = vmatpush1.msra.mxu1 %v588_v6  ;;  %p1166_p9 = pnand %p1165_p7, %p1159_p0 }
  0x94   : > { %596 = vmatprep.subr.mxu0 %v587_v7  ;;  %926 = vmatprep.subr.mxu1 %v587_v7 }
  0x95   : > { %597 = vmatpush1.msra.mxu0 %v586_v8  ;;  %942 = vmatpush1.msra.mxu1 %v586_v8 }
  0x96   : > { %598 = vmatprep.subr.mxu0 %v585_v9  ;;  %927 = vmatprep.subr.mxu1 %v585_v9 }
  0x97   : > { %599 = vmatpush1.msra.mxu0 %v584_v10  ;;  %943 = vmatpush1.msra.mxu1 %v584_v10 }
  0x98   : > { %600 = vmatprep.subr.mxu0 %v583_v11  ;;  %928 = vmatprep.subr.mxu1 %v583_v11 }
  0x99   : > { %601 = vmatpush1.msra.mxu0 %v582_v12  ;;  %944 = vmatpush1.msra.mxu1 %v582_v12 }
  0x9a   : > { %602 = vmatprep.subr.mxu0 %v581_v13  ;;  %929 = vmatprep.subr.mxu1 %v581_v13 }
  0x9b   : > { %603 = vmatpush1.msra.mxu0 %v580_v14  ;;  %945 = vmatpush1.msra.mxu1 %v580_v14 }
  0x9c   : > { %604 = vmatprep.subr.mxu0 %v579_v15  ;;  %930 = vmatprep.subr.mxu1 %v579_v15 }
  0x9d   : > { %605 = vmatpush1.msra.mxu0 %v578_v16  ;;  %946 = vmatpush1.msra.mxu1 %v578_v16 }
  0x9e   : > { %606 = vmatprep.subr.mxu0 %v577_v17  ;;  %931 = vmatprep.subr.mxu1 %v577_v17 }
  0x9f   : > { %607 = vmatpush1.msra.mxu0 %v576_v18  ;;  %947 = vmatpush1.msra.mxu1 %v576_v18 }
  0xa0   : > { %608 = vmatprep.subr.mxu0 %v575_v19  ;;  %932 = vmatprep.subr.mxu1 %v575_v19 }
  0xa1   : > { %609 = vmatpush1.msra.mxu0 %v574_v20  ;;  %948 = vmatpush1.msra.mxu1 %v574_v20 }
  0xa2   : > { %610 = vmatprep.subr.mxu0 %v573_v21  ;;  %933 = vmatprep.subr.mxu1 %v573_v21 }
  0xa3   : > { %611 = vmatpush1.msra.mxu0 %v572_v22  ;;  %949 = vmatpush1.msra.mxu1 %v572_v22 }
  0xa4   : > { %612 = vmatprep.subr.mxu0 %v571_v23  ;;  %934 = vmatprep.subr.mxu1 %v571_v23 }
  0xa5   : > { %613 = vmatpush1.msra.mxu0 %v570_v24  ;;  %950 = vmatpush1.msra.mxu1 %v570_v24 }
  0xa6   : > { %614 = vmatprep.subr.mxu0 %v569_v25  ;;  %935 = vmatprep.subr.mxu1 %v569_v25 }
  0xa7   : > { %615 = vmatpush1.msra.mxu0 %v568_v26  ;;  %951 = vmatpush1.msra.mxu1 %v568_v26 }
  0xa8   : > { %616 = vmatprep.subr.mxu0 %v567_v27  ;;  %936 = vmatprep.subr.mxu1 %v567_v27 }
  0xa9   : > { %436 = vmatprep.mubr.f32.mxu0 %v1294_v0  ;;  %549 = vmatprep.mubr.f32.mxu1 %v1294_v0 }
  0xaa   : > { %617 = vmatpush1.msra.mxu0 %v566_v28  ;;  %952 = vmatpush1.msra.mxu1 %v566_v28 }
  0xab   : > { %437 = vmatmul.mubr.f32.gmra.mxu0 %v333_v29  ;;  %550 = vmatmul.mubr.f32.gmra.mxu1 %v333_v29 }
  0xac   : > { %618 = vmatprep.subr.mxu0 %v565_v30  ;;  %937 = vmatprep.subr.mxu1 %v565_v30 }
  0xad   : > { %619 = vmatpush1.msra.mxu0 %v564_v31  ;;  %953 = vmatpush1.msra.mxu1 %v564_v31 }
  0xae   : > { %620 = vmatprep.subr.mxu0 %v563_v32  ;;  %938 = vmatprep.subr.mxu1 %v563_v32 }
  0xaf   : > { %621 = vmatpush1.msra.mxu0 %v562_v33  ;;  %954 = vmatpush1.msra.mxu1 %v562_v33 }
  0xb0   : > { %622 = vmatprep.subr.mxu0 %v561_v34  ;;  %939 = vmatprep.subr.mxu1 %v561_v34 }
  0xb1   : > { %623 = vmatpush1.msra.mxu0 %v560_v35  ;;  %955 = vmatpush1.msra.mxu1 %v560_v35 }
  0xb2   : > { %656 = vmatprep.mubr.f32.mxu0 %v1294_v0  ;;  %662 = vmatprep.mubr.f32.mxu1 %v1294_v0 }
  0xb3   : > { %657 = vmatmul.mubr.f32.vlgmr.msra.gmra.mxu0 %v1493_v2  ;;  %663 = vmatmul.mubr.f32.vlgmr.msra.gmra.mxu1 %v333_v29 }
 0x14f   : > { %v432_v36 = vpop.f32.mrf.mxu0  ;;  %v545_v37 = vpop.f32.mrf.mxu1 }
 0x150   : > { %443 = vst [vmem:[%s317_s29] sm:$0xff] %v432_v36  ;;  %556 = vst [vmem:[%s324_s19] sm:$0xff] %v545_v37 }
 0x151   : > { %v434_v38 = vpop.f32.mrf.mxu0  ;;  %v547_v39 = vpop.f32.mrf.mxu1 }
 0x152   : > { %444 = vst [vmem:[%s317_s29 + $0x8] sm:$0xff] %v434_v38  ;;  %557 = vst [vmem:[%s324_s19 + $0x8] sm:$0xff] %v547_v39 }
 0x16b   : > { %v438_v0 = vpop.f32.mrf.mxu0  ;;  %v551_v40 = vpop.f32.mrf.mxu1 }
 0x16c   : > { %445 = vst [vmem:[%s317_s29 + $0x10] sm:$0xff] %v438_v0  ;;  %558 = vst [vmem:[%s324_s19 + $0x10] sm:$0xff] %v551_v40 }
 0x16d   : > { %v440_v41 = vpop.f32.mrf.mxu0  ;;  %v553_v42 = vpop.f32.mrf.mxu1 }
 0x16e   : > { %446 = vst [vmem:[%s317_s29 + $0x18] sm:$0xff] %v440_v41  ;;  %559 = vst [vmem:[%s324_s19 + $0x18] sm:$0xff] %v553_v42 }
 0x16f   : > { %1169 = shalt.err (!%p1166_p9)
}
 0x170   : > { %s1170_s29 = scalar_lea.hbm %s1520_s11, 512  ;;  %s1174_s25 = scalar_lea.hbm %s1636_s5, 1024 }
 0x171   : > { %p1171_p1 = scmp.ne.s32.totalorder %s1520_s11, %s1170_s29  ;;  %p1175_p11 = scmp.lt.s32.totalorder %s1520_s11, %s1636_s5 }
 0x172   : > { %p1176_p13 = scmp.lt.s32.totalorder %s1174_s25, %s1170_s29 }
 0x173   : > { %p1172_p8 = pnand %p1171_p1, %p1658_p6 }
 0x174   : > { %p1177_p2 = por %p1176_p13, %p1175_p11 }
 0x175   : > { %p1173_p10 = pneg %p1172_p8 }
 0x177   : > { %p1178_p4 = pnand %p1177_p2, %p1173_p10 }
 0x179   : > { %1181 = shalt.err (!%p1178_p4)
}
 0x17a   : > { %s1296_s0 = smov 256   ;;  %s1297_s15 = smov 16  }
 0x17b   : > { %971 = dma.vmem_to_hbm [thread:$0]  (%p1658_p6), %s1514_s7, 512, %s1520_s11, %s1528_s14, %s1296_s0, %s1296_s0, %s1297_s15  }
 0x17c   : > { %s674_s8 = scalar_lea.sflag [#allocation4], %s1472_s12  ;;  %s1182_s29 = scalar_lea.vmem %s1512_s30, 512 }
 0x17d   : > { %p1183_p12 = scmp.ne.s32.totalorder %s1512_s30, %s1182_s29  ;;  %s1298_s19 = smov [#allocation10]  }
 0x17e   : > { %s1186_s9 = sshll.u32 %s1298_s19, 4  ;;  %s1187_s9 = int_to_ptr.vmem [resolvable:$false] %s1186_s9 }
 0x17f   : > { %p1184_p0 = pnand %p1183_p12, %p1658_p6  ;;  %s1188_s25 = scalar_lea.vmem %s1187_s9, 1024 }
 0x180   : > { %p1189_p3 = scmp.lt.s32.totalorder %s1512_s30, %s1187_s9  ;;  %p1190_p7 = scmp.lt.s32.totalorder %s1188_s25, %s1182_s29 }
 0x181   : > { %p1185_p5 = pneg %p1184_p0 }
 0x182   : > { %p1191_p9 = por %p1190_p7, %p1189_p3 }
 0x184   : > { %p1192_p1 = pnand %p1191_p9, %p1185_p5 }
 0x186   : > { %1195 = shalt.err (!%p1192_p1)
}
 0x187   : > { %s1196_s7 = scalar_lea.hbm %s1526_s26, 512  ;;  %s1200_s18 = scalar_lea.hbm %s1635_s4, 1024 }
 0x188   : > { %p1197_p8 = scmp.ne.s32.totalorder %s1526_s26, %s1196_s7  ;;  %p1201_p13 = scmp.lt.s32.totalorder %s1526_s26, %s1635_s4 }
 0x189   : > { %p1202_p2 = scmp.lt.s32.totalorder %s1200_s18, %s1196_s7 }
 0x18a   : > { %p1198_p10 = pnand %p1197_p8, %p1658_p6 }
 0x18b   : > { %p1203_p4 = por %p1202_p2, %p1201_p13 }
 0x18c   : > { %p1199_p11 = pneg %p1198_p10 }
 0x18e   : > { %p1204_p12 = pnand %p1203_p4, %p1199_p11 }
 0x190   : > { %1207 = shalt.err (!%p1204_p12)
}
 0x191   : > { %970 = dma.vmem_to_hbm [thread:$0]  (%p1658_p6), %s1512_s30, 512, %s1526_s26, %s674_s8, %s1296_s0, %s1296_s0, %s1297_s15   ;;  %v658_v43 = vpop.f32.mrf.mxu0  ;;  %v664_v44 = vpop.f32.mrf.mxu1 }
 0x192   : > { %s331_s29 = scalar_lea.vmem [#allocation13], %s1504_s27  ;;  %s1585_s12 = scalar_lea.hbm %s1637_s6, %s1510_s17 }
 0x193   : > { %s729_s9 = sshll.u32 %s331_s29, 4  ;;  %669 = vst [vmem:[%s331_s29] sm:$0xff] %v658_v43  ;;  %671 = vst [vmem:[%s331_s29 + $0x10] sm:$0xff] %v664_v44  ;;  %v660_v45 = vpop.f32.mrf.mxu0  ;;  %v666_v46 = vpop.f32.mrf.mxu1  ;;  %s1299_s30 = smov [#allocation13]   ;;  %s1579_s9 = int_to_ptr.vmem [resolvable:$true] %s729_s9 }
 0x194   : > { %670 = vst [vmem:[%s331_s29 + $0x8] sm:$0xff] %v660_v45  ;;  %672 = vst [vmem:[%s331_s29 + $0x18] sm:$0xff] %v666_v46  ;;  %s1208_s27 = scalar_lea.vmem %s1579_s9, 512  ;;  %s1212_s26 = sshll.u32 %s1299_s30, 4  ;;  %s1213_s26 = int_to_ptr.vmem [resolvable:$false] %s1212_s26 }
 0x195   : > { %p1209_p0 = scmp.ne.s32.totalorder %s1579_s9, %s1208_s27  ;;  %s1214_s8 = scalar_lea.vmem %s1213_s26, 1024 }
 0x196   : > { %p1215_p7 = scmp.lt.s32.totalorder %s1579_s9, %s1213_s26  ;;  %p1216_p9 = scmp.lt.s32.totalorder %s1214_s8, %s1208_s27 }
 0x197   : > { %p1210_p5 = pnand %p1209_p0, %p1658_p6 }
 0x198   : > { %p1217_p1 = por %p1216_p9, %p1215_p7 }
 0x199   : > { %p1211_p3 = pneg %p1210_p5 }
 0x19b   : > { %p1218_p8 = pnand %p1217_p1, %p1211_p3 }
 0x19d   : > { %1221 = shalt.err (!%p1218_p8)
}
 0x19e   : > { %s1222_s17 = scalar_lea.hbm %s1585_s12, 512  ;;  %s1226_s20 = scalar_lea.hbm %s1637_s6, 1024 }
 0x19f   : > { %p1223_p10 = scmp.ne.s32.totalorder %s1585_s12, %s1222_s17  ;;  %p1227_p2 = scmp.lt.s32.totalorder %s1585_s12, %s1637_s6 }
 0x1a0   : > { %p1228_p4 = scmp.lt.s32.totalorder %s1226_s20, %s1222_s17 }
 0x1a1   : > { %p1224_p11 = pnand %p1223_p10, %p1658_p6 }
 0x1a2   : > { %p1229_p12 = por %p1228_p4, %p1227_p2 }
 0x1a3   : > { %p1225_p13 = pneg %p1224_p11 }
 0x1a5   : > { %p1230_p0 = pnand %p1229_p12, %p1225_p13 }
 0x1a7   : > { %1233 = shalt.err (!%p1230_p0)
}
 0x1a8   : > { %972 = dma.vmem_to_hbm [thread:$0]  (%p1658_p6), %s1579_s9, 512, %s1585_s12, %s1528_s14, %s1296_s0, %s1296_s0, %s1297_s15  }
 0x1a9 PF: > { %s744_s25 = sand.u32 1, %s1272_s21   ;;  %p1659_p5 = scmp.ne.s32.totalorder %s1645_s28, 0 }
 0x1aa   : > { %p1660_p3 = scmp.ge.s32.totalorder %s1284_s24, 2  ;;  %s745_s7 = scalar_lea.sflag [#allocation4], %s744_s25 }
 0x1ac   : > { %p991_p7 = pnand %p1660_p3, %p1659_p5 }
 0x1ae   : > { %p992_p9 = pneg %p991_p7 }
 0x1b0   : > { %1263 = dma.done.wait (%p992_p9), %s745_s7, 512  }
 0x1b1   : > { %1265 = vsyncadd (%p992_p9), %s745_s7, 4294966784  ;;  %s1661_s16 = sadd.s32 4294967294, %s1284_s24  }
 0x1b2   : > { %s753_s27 = sand.u32 1, %s1661_s16  }
 0x1b3   : > { %s754_s30 = scalar_lea.sflag [#allocation12], %s753_s27 }
 0x1b4   : > { %1267 = dma.done.wait (%p992_p9), %s754_s30, 1024  }
 0x1b5   : > { %1269 = vsyncadd (%p992_p9), %s754_s30, 4294966272  ;;  %p25_p6 = scmp.ge.s32.totalorder %s1417_s10, 4   ;;  %s1662_s21 = smov %s1276_s22 }
 0x1b6   : > { %s1663_s22 = smov %s1280_s23  ;;  %s1664_s23 = smov %s1427_s13 }
 0x1b7   : > { %s1665_s24 = smov %s1417_s10  ;;  %27 = sbr.rel (!%p25_p6) target bundleno = 11 (0xb), region = 125 }
 0x1bc   :  { %768 = vsyncpa [#allocation3], 1 }
 0x1bd   :  { %770 = vsyncpa [#allocation3 + $0x1], 1 }
 0x1be   :  { %771 = vsyncpa [#allocation6], 1 }
 0x1bf   :  { %772 = vsyncpa [#allocation9], 1 }
 0x1c0   :  { %773 = vsyncpa [#allocation4], 1 }
 0x1c1   :  { %775 = vsyncpa [#allocation4 + $0x1], 1 }
 0x1c2   :  { %776 = vsyncpa [#allocation12], 1 }
 0x1c3   :  { %778 = vsyncpa [#allocation12 + $0x1], 1 }

</bundles_post_ra>
